<compile_context>
chip_gen: v7x
topology: tpu7x:2x2x1
jax: 0.10.0
libtpu: 0.0.40
codegen_flags: <defaults>
</compile_context>

<pallas_src>
from functools import partial

import jax
import jax.numpy as jnp
from jax.experimental import pallas as pl
from jax.experimental.pallas import tpu as pltpu


def _round_up(x, m):
    return ((x + m - 1) // m) * m


def _cdiv(a, b):
    return -(-a // b)


def _default_bf16_activations():
    """bf16 VPU/EUP exists on v6e/v7x; fall back to f32 activations elsewhere (v5e...)."""
    try:
        kind = jax.devices()[0].device_kind.lower()
    except Exception:
        return False
    return any(tag in kind for tag in ("v6", "v7"))


def _generator_kernel(x_ref, w1_ref, b1_ref, w2_ref, b2_ref, w3_ref, b3_ref, o_ref,
                      *, act_dtype):
    # Layer 1: Linear (bf16 operands, f32 accumulation) + LeakyReLU(0.2)
    h = jnp.dot(x_ref[...], w1_ref[...], preferred_element_type=jnp.float32) + b1_ref[...]
    h = h.astype(act_dtype)
    h = jnp.maximum(h, 0.2 * h)          # exact LeakyReLU(0.2), single vmax
    # Layer 2: Linear + LeakyReLU(0.2)
    h = jnp.dot(h.astype(w2_ref.dtype), w2_ref[...],
                preferred_element_type=jnp.float32) + b2_ref[...]
    h = h.astype(act_dtype)
    h = jnp.maximum(h, 0.2 * h)
    # Layer 3: Linear + Tanh, stored as bf16 (halves output HBM traffic)
    h = jnp.dot(h.astype(w3_ref.dtype), w3_ref[...],
                preferred_element_type=jnp.float32) + b3_ref[...]
    o_ref[...] = jnp.tanh(h.astype(act_dtype)).astype(o_ref.dtype)


def prepare_generator_params(params, *, compute_dtype=jnp.bfloat16):
    """One-time pad + cast of the weights/biases (hoisted out of the per-call path).

    params: dict of w1,b1,w2,b2,w3,b3 with weights in (in_features, out_features) layout.
    Returns a dict of padded bf16 weights, padded f32 biases, and the logical/padded dims.
    """
    latent, hidden = params["w1"].shape
    image = params["w3"].shape[1]
    latent_p = _round_up(latent, 128)
    hidden_p = _round_up(hidden, 128)
    image_p = _round_up(image, 128)

    def pad_w(w, r, c):
        return jnp.zeros((r, c), compute_dtype).at[:w.shape[0], :w.shape[1]].set(
            w.astype(compute_dtype))

    def pad_b(b, c):
        return jnp.zeros((1, c), jnp.float32).at[:, :b.shape[-1]].set(
            b.reshape(1, -1).astype(jnp.float32))

    return {
        "w1": pad_w(params["w1"], latent_p, hidden_p), "b1": pad_b(params["b1"], hidden_p),
        "w2": pad_w(params["w2"], hidden_p, hidden_p), "b2": pad_b(params["b2"], hidden_p),
        "w3": pad_w(params["w3"], hidden_p, image_p), "b3": pad_b(params["b3"], image_p),
        "dims": dict(latent=latent, hidden=hidden, image=image,
                     latent_p=latent_p, hidden_p=hidden_p, image_p=image_p),
        "compute_dtype": compute_dtype,
    }


def generator_forward(x, prepared, *, batch_tile=1024, bf16_activations=None):
    """x: (B, latent). prepared: output of prepare_generator_params()."""
    d = prepared["dims"]
    compute_dtype = prepared["compute_dtype"]
    B, latent = x.shape
    assert latent == d["latent"], (latent, d["latent"])
    latent_p, hidden_p, image_p = d["latent_p"], d["hidden_p"], d["image_p"]

    if bf16_activations is None:
        bf16_activations = _default_bf16_activations()
    act_dtype = jnp.bfloat16 if bf16_activations else jnp.float32

    # Batch tile: 16-aligned (bf16 sublane packing), big enough to fill the MXU, but
    # capped at ceil(B/2) so large batches give >=2 grid steps ("parallel" -> both v7x TCs).
    tile_b = min(batch_tile, _round_up(_cdiv(B, 2), 16), _round_up(B, 16))
    tile_b = max(16, _round_up(tile_b, 16))
    B_p = _round_up(B, tile_b)

    # Per-call work on the activations only: zero-pad batch/latent and cast to bf16.
    xp = jnp.zeros((B_p, latent_p), compute_dtype).at[:B, :latent].set(
        x.astype(compute_dtype))

    grid = (B_p // tile_b,)

    # Weights/biases use constant index_maps so they stay VMEM-resident across the grid.
    # NOTE: footprint is small (<1 MiB) so default (double) buffering of the weight
    # blocks is left alone; no vmem_limit override needed at tile_b<=1024 / bf16 output.
    in_specs = [
        pl.BlockSpec((tile_b, latent_p), lambda i: (i, 0)),    # x tile
        pl.BlockSpec((latent_p, hidden_p), lambda i: (0, 0)),  # w1
        pl.BlockSpec((1, hidden_p), lambda i: (0, 0)),         # b1
        pl.BlockSpec((hidden_p, hidden_p), lambda i: (0, 0)),  # w2
        pl.BlockSpec((1, hidden_p), lambda i: (0, 0)),         # b2
        pl.BlockSpec((hidden_p, image_p), lambda i: (0, 0)),   # w3
        pl.BlockSpec((1, image_p), lambda i: (0, 0)),          # b3
    ]
    out_spec = pl.BlockSpec((tile_b, image_p), lambda i: (i, 0))

    out_padded = pl.pallas_call(
        partial(_generator_kernel, act_dtype=act_dtype),
        out_shape=jax.ShapeDtypeStruct((B_p, image_p), jnp.bfloat16),
        grid_spec=pltpu.PrefetchScalarGridSpec(
            num_scalar_prefetch=0,
            grid=grid,
            in_specs=in_specs,
            out_specs=out_spec,
        ),
        compiler_params=pltpu.CompilerParams(
            dimension_semantics=("parallel",),   # batch tiles shard across TCs (v7x)
        ),
    )(xp, prepared["w1"], prepared["b1"], prepared["w2"], prepared["b2"],
      prepared["w3"], prepared["b3"])

    return out_padded[:B, :d["image"]]


def init_generator_params(key, image_size, hidden_size=256, latent_size=64):
    """Deterministic init mimicking torch.nn.Linear default (uniform +-1/sqrt(fan_in)).
    Weights are stored as (in_features, out_features)."""
    ks = jax.random.split(key, 6)

    def linear(kw, kb, fan_in, fan_out):
        bound = 1.0 / jnp.sqrt(jnp.float32(fan_in))
        w = jax.random.uniform(kw, (fan_in, fan_out), jnp.float32, -bound, bound)
        b = jax.random.uniform(kb, (1, fan_out), jnp.float32, -bound, bound)
        return w, b

    w1, b1 = linear(ks[0], ks[1], latent_size, hidden_size)
    w2, b2 = linear(ks[2], ks[3], hidden_size, hidden_size)
    w3, b3 = linear(ks[4], ks[5], hidden_size, image_size)
    return {"w1": w1, "b1": b1, "w2": w2, "b2": b2, "w3": w3, "b3": b3}


def _reference_forward(x, p):
    h = x @ p["w1"] + p["b1"]
    h = jnp.where(h > 0, h, 0.2 * h)
    h = h @ p["w2"] + p["b2"]
    h = jnp.where(h > 0, h, 0.2 * h)
    h = h @ p["w3"] + p["b3"]
    return jnp.tanh(h)


if __name__ == "__main__":
    # Small demo shapes; image_size deliberately NOT a 128-multiple and batch NOT a
    # tile multiple, to exercise the pad-and-slice paths.
    image_size = 200
    hidden_size = 256
    latent_size = 64
    batch = 16

    key = jax.random.PRNGKey(0)
    k_params, k_x = jax.random.split(key)
    params = init_generator_params(k_params, image_size, hidden_size, latent_size)
    x = jax.random.normal(k_x, (batch, latent_size), jnp.float32)

    # One-time weight prep (padding + bf16 cast hoisted out of the per-call path).
    prepared = prepare_generator_params(params)

    out = generator_forward(x, prepared)
    out = jax.block_until_ready(out)

    ref = _reference_forward(x, params)
    assert out.shape == (batch, image_size), out.shape
    # bf16 MXU inputs / activations / output with f32 accumulation: loosened tolerance.
    max_err = float(jnp.max(jnp.abs(out.astype(jnp.float32) - ref)))
    assert max_err < 3e-2, f"mismatch vs reference, max abs err = {max_err}"

    print("KERNEL_OK")
</pallas_src>

<mosaic_0001>
module attributes {stable_mosaic.version = 11 : i64} {
  func.func @_generator_kernel(%arg0: i32, %arg1: memref<16x128xbf16, #tpu.memory_space<vmem>>, %arg2: memref<128x256xbf16, #tpu.memory_space<vmem>>, %arg3: memref<1x256xf32, #tpu.memory_space<vmem>>, %arg4: memref<256x256xbf16, #tpu.memory_space<vmem>>, %arg5: memref<1x256xf32, #tpu.memory_space<vmem>>, %arg6: memref<256x256xbf16, #tpu.memory_space<vmem>>, %arg7: memref<1x256xf32, #tpu.memory_space<vmem>>, %arg8: memref<16x256xbf16, #tpu.memory_space<vmem>>) attributes {dimension_semantics = [#tpu.dimension_semantics<parallel>], iteration_bounds = array<i64: 1>, scalar_prefetch = 0 : i64, scratch_operands = 0 : i64, tpu.core_type = #tpu.core_type<tc>, window_params = [{transform_indices = @transform_0, window_bounds = array<i64: 16, 128>}, {pipeline_mode = #tpu.pipeline_mode<synchronous>, transform_indices = @transform_1, window_bounds = array<i64: 128, 256>}, {pipeline_mode = #tpu.pipeline_mode<synchronous>, transform_indices = @transform_2, window_bounds = array<i64: 1, 256>}, {pipeline_mode = #tpu.pipeline_mode<synchronous>, transform_indices = @transform_3, window_bounds = array<i64: 256, 256>}, {pipeline_mode = #tpu.pipeline_mode<synchronous>, transform_indices = @transform_4, window_bounds = array<i64: 1, 256>}, {pipeline_mode = #tpu.pipeline_mode<synchronous>, transform_indices = @transform_5, window_bounds = array<i64: 256, 256>}, {pipeline_mode = #tpu.pipeline_mode<synchronous>, transform_indices = @transform_6, window_bounds = array<i64: 1, 256>}, {transform_indices = @transform_7, window_bounds = array<i64: 16, 256>}]} {
    %c0 = arith.constant 0 : index
    %c0_0 = arith.constant 0 : index
    %0 = vector.load %arg1[%c0, %c0_0] : memref<16x128xbf16, #tpu.memory_space<vmem>>, vector<16x128xbf16>
    %c0_1 = arith.constant 0 : index
    %c0_2 = arith.constant 0 : index
    %1 = vector.load %arg2[%c0_1, %c0_2] : memref<128x256xbf16, #tpu.memory_space<vmem>>, vector<128x256xbf16>
    %cst = arith.constant dense<0.000000e+00> : vector<16x256xf32>
    %2 = tpu.matmul %0, %1, %cst {dimension_numbers = #tpu.dot_dimension_numbers<[1], [0], [0], [1], [0, 0, 1, 1], [], []>} : vector<16x128xbf16>, vector<128x256xbf16>, vector<16x256xf32> -> vector<16x256xf32>
    %c0_3 = arith.constant 0 : index
    %c0_4 = arith.constant 0 : index
    %3 = vector.load %arg3[%c0_3, %c0_4] : memref<1x256xf32, #tpu.memory_space<vmem>>, vector<1x256xf32>
    %4 = vector.broadcast %3 : vector<1x256xf32> to vector<16x256xf32>
    %5 = arith.addf %2, %4 : vector<16x256xf32>
    %cst_5 = arith.constant 2.000000e-01 : f32
    %6 = vector.broadcast %cst_5 : f32 to vector<16x256xf32>
    %7 = arith.mulf %6, %5 : vector<16x256xf32>
    %8 = arith.maximumf %5, %7 : vector<16x256xf32>
    %9 = arith.truncf %8 : vector<16x256xf32> to vector<16x256xbf16>
    %c0_6 = arith.constant 0 : index
    %c0_7 = arith.constant 0 : index
    %10 = vector.load %arg4[%c0_6, %c0_7] : memref<256x256xbf16, #tpu.memory_space<vmem>>, vector<256x256xbf16>
    %cst_8 = arith.constant dense<0.000000e+00> : vector<16x256xf32>
    %11 = tpu.matmul %9, %10, %cst_8 {dimension_numbers = #tpu.dot_dimension_numbers<[1], [0], [0], [1], [0, 0, 1, 1], [], []>} : vector<16x256xbf16>, vector<256x256xbf16>, vector<16x256xf32> -> vector<16x256xf32>
    %c0_9 = arith.constant 0 : index
    %c0_10 = arith.constant 0 : index
    %12 = vector.load %arg5[%c0_9, %c0_10] : memref<1x256xf32, #tpu.memory_space<vmem>>, vector<1x256xf32>
    %13 = vector.broadcast %12 : vector<1x256xf32> to vector<16x256xf32>
    %14 = arith.addf %11, %13 : vector<16x256xf32>
    %cst_11 = arith.constant 2.000000e-01 : f32
    %15 = vector.broadcast %cst_11 : f32 to vector<16x256xf32>
    %16 = arith.mulf %15, %14 : vector<16x256xf32>
    %17 = arith.maximumf %14, %16 : vector<16x256xf32>
    %18 = arith.truncf %17 : vector<16x256xf32> to vector<16x256xbf16>
    %c0_12 = arith.constant 0 : index
    %c0_13 = arith.constant 0 : index
    %19 = vector.load %arg6[%c0_12, %c0_13] : memref<256x256xbf16, #tpu.memory_space<vmem>>, vector<256x256xbf16>
    %cst_14 = arith.constant dense<0.000000e+00> : vector<16x256xf32>
    %20 = tpu.matmul %18, %19, %cst_14 {dimension_numbers = #tpu.dot_dimension_numbers<[1], [0], [0], [1], [0, 0, 1, 1], [], []>} : vector<16x256xbf16>, vector<256x256xbf16>, vector<16x256xf32> -> vector<16x256xf32>
    %c0_15 = arith.constant 0 : index
    %c0_16 = arith.constant 0 : index
    %21 = vector.load %arg7[%c0_15, %c0_16] : memref<1x256xf32, #tpu.memory_space<vmem>>, vector<1x256xf32>
    %22 = vector.broadcast %21 : vector<1x256xf32> to vector<16x256xf32>
    %23 = arith.addf %20, %22 : vector<16x256xf32>
    %24 = math.tanh %23 : vector<16x256xf32>
    %25 = arith.truncf %24 : vector<16x256xf32> to vector<16x256xbf16>
    %c0_17 = arith.constant 0 : index
    %c0_18 = arith.constant 0 : index
    %26 = vector.load %arg8[%c0_17, %c0_18] : memref<16x256xbf16, #tpu.memory_space<vmem>>, vector<16x256xbf16>
    tpu.vector_store %arg8[%c0_17, %c0_18], %25 {strides = array<i32>} : memref<16x256xbf16, #tpu.memory_space<vmem>>, vector<16x256xbf16>,
    return
  }
  func.func @transform_0(%arg0: i32) -> (i32, i32) {
    %c0_i32 = arith.constant 0 : i32
    %c0_i32_0 = arith.constant 0 : i32
    return %arg0, %c0_i32 : i32, i32
  }
  func.func @transform_1(%arg0: i32) -> (i32, i32) {
    %c0_i32 = arith.constant 0 : i32
    %c0_i32_0 = arith.constant 0 : i32
    %c0_i32_1 = arith.constant 0 : i32
    return %c0_i32, %c0_i32_0 : i32, i32
  }
  func.func @transform_2(%arg0: i32) -> (i32, i32) {
    %c0_i32 = arith.constant 0 : i32
    %c0_i32_0 = arith.constant 0 : i32
    %c0_i32_1 = arith.constant 0 : i32
    return %c0_i32, %c0_i32_0 : i32, i32
  }
  func.func @transform_3(%arg0: i32) -> (i32, i32) {
    %c0_i32 = arith.constant 0 : i32
    %c0_i32_0 = arith.constant 0 : i32
    %c0_i32_1 = arith.constant 0 : i32
    return %c0_i32, %c0_i32_0 : i32, i32
  }
  func.func @transform_4(%arg0: i32) -> (i32, i32) {
    %c0_i32 = arith.constant 0 : i32
    %c0_i32_0 = arith.constant 0 : i32
    %c0_i32_1 = arith.constant 0 : i32
    return %c0_i32, %c0_i32_0 : i32, i32
  }
  func.func @transform_5(%arg0: i32) -> (i32, i32) {
    %c0_i32 = arith.constant 0 : i32
    %c0_i32_0 = arith.constant 0 : i32
    %c0_i32_1 = arith.constant 0 : i32
    return %c0_i32, %c0_i32_0 : i32, i32
  }
  func.func @transform_6(%arg0: i32) -> (i32, i32) {
    %c0_i32 = arith.constant 0 : i32
    %c0_i32_0 = arith.constant 0 : i32
    %c0_i32_1 = arith.constant 0 : i32
    return %c0_i32, %c0_i32_0 : i32, i32
  }
  func.func @transform_7(%arg0: i32) -> (i32, i32) {
    %c0_i32 = arith.constant 0 : i32
    %c0_i32_0 = arith.constant 0 : i32
    return %arg0, %c0_i32 : i32, i32
  }
}

</mosaic_0001>

<bundles_post_ra>
// kernel: tpu_custom_call.1
= control target key start
LH: loop header
LB: loop body
LE: loop exit
PB: predicated region body
PF: predicated region fallthrough
CT: control target
= control target key end

     0   :  { %12 = vsyncpa [#allocation3], 0  ;;  %s1273_s0 = inlined_call_operand.hbm [shape: bf16[16,128], index: 0, kind: input, shape index: {}]   ;;  %s1274_s1 = inlined_call_operand.hbm [shape: bf16[128,256], index: 1, kind: input, shape index: {}]   ;;  %s1275_s2 = inlined_call_operand.vmem [shape: f32[1,256], index: 2, kind: input, shape index: {}]   ;;  %s1276_s3 = inlined_call_operand.hbm [shape: bf16[256,256], index: 3, kind: input, shape index: {}]   ;;  %s1277_s4 = inlined_call_operand.vmem [shape: f32[1,256], index: 4, kind: input, shape index: {}]   ;;  %s1278_s5 = inlined_call_operand.hbm [shape: bf16[256,256], index: 5, kind: input, shape index: {}]   ;;  %s1279_s6 = inlined_call_operand.vmem [shape: f32[1,256], index: 6, kind: input, shape index: {}]   ;;  %s1280_s7 = inlined_call_operand.hbm [shape: bf16[16,256], index: 7, kind: output, shape index: {}]  }
   0x1   :  { %13 = vsyncpa [#allocation6], 0 }
   0x2   :  { %14 = vsyncpa [#allocation9], 0 }
   0x3   :  { %15 = vsyncpa [#allocation4], 0  ;;  %s1135_s24 = smov [#allocation5]   ;;  %s1017_s28 = scalar_lea.hbm %s1274_s1, 2048 }
   0x4   :  { %s33_s25 = sshll.u32 %s1135_s24, 4  ;;  %p1018_p0 = scmp.ne.s32.totalorder %s1274_s1, %s1017_s28  ;;  %s34_s25 = int_to_ptr.vmem [resolvable:$true] %s33_s25 }
   0x5   :  { %p1021_p1 = scmp.lt.u32.totalorder %s1017_s28, %s1274_s1 }
   0x7   :  { %p1023_p2 = pnand %p1021_p1, %p1018_p0 }
   0x9   :  { %1026 = shalt.err (!%p1023_p2)
}
   0xa   :  { %s1027_s10 = scalar_lea.vmem %s34_s25, 2048  ;;  %p1032_p4 = scmp.lt.s32.totalorder %s34_s25, %s34_s25 }
   0xb   :  { %p1028_p3 = scmp.ne.s32.totalorder %s34_s25, %s1027_s10  ;;  %p1033_p5 = scmp.lt.s32.totalorder %s1027_s10, %s1027_s10 }
   0xd   :  { %p1034_p6 = por %p1033_p5, %p1032_p4 }
   0xf   :  { %p1035_p7 = pnand %p1034_p6, %p1028_p3 }
  0x11   :  { %1038 = shalt.err (!%p1035_p7)
}
  0x12   :  { %s1136_s11 = smov 128   ;;  %s1137_s12 = smov 8  }
  0x13   :  { %39 = dma.hbm_to_vmem [thread:$0]  %s1274_s1, 2048, %s34_s25, [#allocation6], %s1136_s11, %s1136_s11, %s1137_s12  }
  0x14   :  { %s1138_s15 = smov [#allocation2]   ;;  %s1039_s19 = scalar_lea.hbm %s1273_s0, 128 }
  0x15   :  { %s21_s16 = sshll.u32 %s1138_s15, 4  ;;  %p1040_p8 = scmp.ne.s32.totalorder %s1273_s0, %s1039_s19  ;;  %s22_s16 = int_to_ptr.vmem [resolvable:$true] %s21_s16 }
  0x16   :  { %p1043_p9 = scmp.lt.u32.totalorder %s1039_s19, %s1273_s0 }
  0x18   :  { %p1045_p10 = pnand %p1043_p9, %p1040_p8 }
  0x1a   :  { %1048 = shalt.err (!%p1045_p10)
}
  0x1b   :  { %s1049_s24 = scalar_lea.vmem %s22_s16, 128  ;;  %p1054_p12 = scmp.lt.s32.totalorder %s22_s16, %s22_s16 }
  0x1c   :  { %p1050_p11 = scmp.ne.s32.totalorder %s22_s16, %s1049_s24  ;;  %p1055_p13 = scmp.lt.s32.totalorder %s1049_s24, %s1049_s24 }
  0x1e   :  { %p1056_p0 = por %p1055_p13, %p1054_p12 }
  0x20   :  { %p1057_p1 = pnand %p1056_p0, %p1050_p11 }
  0x22   :  { %1060 = shalt.err (!%p1057_p1)
}
  0x23   :  { %s1139_s1 = smov 64   ;;  %s1140_s25 = smov 4  }
  0x24   :  { %27 = dma.hbm_to_vmem [thread:$0]  %s1273_s0, 128, %s22_s16, [#allocation3], %s1139_s1, %s1139_s1, %s1140_s25  }
  0x25   :  { %s1141_s28 = smov [#allocation7]   ;;  %s1142_s30 = smov [#allocation8]  }
  0x26   :  { %s47_s29 = sshll.u32 %s1141_s28, 4  ;;  %s61_s8 = sshll.u32 %s1142_s30, 4  ;;  %s48_s29 = int_to_ptr.vmem [resolvable:$true] %s47_s29  ;;  %s1212_s8 = int_to_ptr.vmem [resolvable:$true] %s61_s8 }
  0x27   :  { %s1061_s13 = scalar_lea.hbm %s1276_s3, 4096 }
  0x28   :  { %p1062_p2 = scmp.ne.s32.totalorder %s1276_s3, %s1061_s13  ;;  %p1065_p3 = scmp.lt.u32.totalorder %s1061_s13, %s1276_s3 }
  0x2a   :  { %p1067_p4 = pnand %p1065_p3, %p1062_p2 }
  0x2c   :  { %1070 = shalt.err (!%p1067_p4)
}
  0x2d   :  { %s1071_s0 = scalar_lea.vmem %s48_s29, 4096  ;;  %p1076_p6 = scmp.lt.s32.totalorder %s48_s29, %s48_s29 }
  0x2e   :  { %p1072_p5 = scmp.ne.s32.totalorder %s48_s29, %s1071_s0  ;;  %p1077_p7 = scmp.lt.s32.totalorder %s1071_s0, %s1071_s0 }
  0x30   :  { %p1078_p8 = por %p1077_p7, %p1076_p6 }
  0x32   :  { %p1079_p9 = pnand %p1078_p8, %p1072_p5 }
  0x34   :  { %1082 = shalt.err (!%p1079_p9)
}
  0x35   :  { %53 = dma.hbm_to_vmem [thread:$0]  %s1276_s3, 4096, %s48_s29, [#allocation6], %s1136_s11, %s1136_s11, %s1137_s12  }
  0x36   :  { %s1083_s22 = scalar_lea.hbm %s1278_s5, 4096 }
  0x37   :  { %p1084_p10 = scmp.ne.s32.totalorder %s1278_s5, %s1083_s22  ;;  %p1087_p11 = scmp.lt.u32.totalorder %s1083_s22, %s1278_s5 }
  0x39   :  { %p1089_p12 = pnand %p1087_p11, %p1084_p10 }
  0x3b   :  { %1092 = shalt.err (!%p1089_p12)
}
  0x3c   :  { %s1093_s26 = scalar_lea.vmem %s1212_s8, 4096  ;;  %p1098_p0 = scmp.lt.s32.totalorder %s1212_s8, %s1212_s8 }
  0x3d   :  { %p1094_p13 = scmp.ne.s32.totalorder %s1212_s8, %s1093_s26  ;;  %p1099_p1 = scmp.lt.s32.totalorder %s1093_s26, %s1093_s26 }
  0x3f   :  { %p1100_p2 = por %p1099_p1, %p1098_p0 }
  0x41   :  { %p1101_p3 = pnand %p1100_p2, %p1094_p13 }
  0x43   :  { %1104 = shalt.err (!%p1101_p3)
}
  0x44   :  { %67 = dma.hbm_to_vmem [thread:$0]  %s1278_s5, 4096, %s1212_s8, [#allocation9], %s1136_s11, %s1136_s11, %s1137_s12  }
  0x45   :  { %1127 = dma.done.wait [#allocation3], 128  }
  0x46   :  { %1128 = vsyncadd [#allocation3], 4294967168 }
  0x47   :  { %1129 = dma.done.wait [#allocation6], 6144  }
  0x48   :  { %1130 = vsyncadd [#allocation6], 4294961152 }
  0x49   :  { %1131 = dma.done.wait [#allocation9], 4096  }
  0x4a   :  { %1132 = vsyncadd [#allocation9], 4294963200  ;;  %v1143_v0 = vmov 0   ;;  %v888_v1 = vld [vmem:[#allocation5 + $0x4] ss:$8 sps:$4 sm:$0xff]   ;;  %v912_v27 = vld [vmem:[#allocation2] sm:$0xff]  }
  0x4b   :  { %231 = vmatprep.mubr.bf16.mxu0 %v1143_v0  ;;  %v890_v2 = vld [vmem:[#allocation5] ss:$8 sps:$4 sm:$0xff]   ;;  %199 = vmatprep.subr.bf16.mxu0 %v888_v1  ;;  %v891_v3 = vld [vmem:[#allocation5 + $0x14] ss:$8 sps:$4 sm:$0xff]   ;;  %v893_v4 = vld [vmem:[#allocation5 + $0x10] ss:$8 sps:$4 sm:$0xff]  }
  0x4c   :  { %200 = vmatpush1.bf16.msra.mxu0 %v890_v2  ;;  %v894_v5 = vld [vmem:[#allocation5 + $0x24] ss:$8 sps:$4 sm:$0xff]   ;;  %v896_v6 = vld [vmem:[#allocation5 + $0x20] ss:$8 sps:$4 sm:$0xff]   ;;  %v897_v7 = vld [vmem:[#allocation5 + $0x34] ss:$8 sps:$4 sm:$0xff]  }
  0x4d   :  { %201 = vmatprep.subr.bf16.mxu0 %v891_v3  ;;  %v899_v8 = vld [vmem:[#allocation5 + $0x30] ss:$8 sps:$4 sm:$0xff]   ;;  %v900_v9 = vld [vmem:[#allocation5 + $0x44] ss:$8 sps:$4 sm:$0xff]   ;;  %v915_v11 = vld [vmem:[#allocation7] ss:$8 sps:$4 sm:$0xff]  }
  0x4e   :  { %v913_v10 = vld [vmem:[#allocation7 + $0x4] ss:$8 sps:$4 sm:$0xff]   ;;  %v916_v12 = vld [vmem:[#allocation7 + $0x14] ss:$8 sps:$4 sm:$0xff]   ;;  %v902_v13 = vld [vmem:[#allocation5 + $0x40] ss:$8 sps:$4 sm:$0xff]  }
  0x4f   :  { %456 = vmatprep.subr.bf16.mxu1 %v913_v10  ;;  %v918_v14 = vld [vmem:[#allocation7 + $0x10] ss:$8 sps:$4 sm:$0xff]   ;;  %v903_v15 = vld [vmem:[#allocation5 + $0x54] ss:$8 sps:$4 sm:$0xff]   ;;  %v919_v16 = vld [vmem:[#allocation7 + $0x24] ss:$8 sps:$4 sm:$0xff]  }
  0x50   :  { %202 = vmatpush1.bf16.msra.mxu0 %v893_v4  ;;  %457 = vmatpush1.bf16.msra.mxu1 %v915_v11  ;;  %v905_v17 = vld [vmem:[#allocation5 + $0x50] ss:$8 sps:$4 sm:$0xff]   ;;  %v921_v18 = vld [vmem:[#allocation7 + $0x20] ss:$8 sps:$4 sm:$0xff]   ;;  %v906_v19 = vld [vmem:[#allocation5 + $0x64] ss:$8 sps:$4 sm:$0xff]  }
  0x51   :  { %203 = vmatprep.subr.bf16.mxu0 %v894_v5  ;;  %458 = vmatprep.subr.bf16.mxu1 %v916_v12  ;;  %v922_v20 = vld [vmem:[#allocation7 + $0x34] ss:$8 sps:$4 sm:$0xff]   ;;  %v908_v21 = vld [vmem:[#allocation5 + $0x60] ss:$8 sps:$4 sm:$0xff]   ;;  %v924_v22 = vld [vmem:[#allocation7 + $0x30] ss:$8 sps:$4 sm:$0xff]   ;;  %v103_v12 = vlaneseq }
  0x52   :  { %v909_v23 = vld [vmem:[#allocation5 + $0x74] ss:$8 sps:$4 sm:$0xff]   ;;  %v925_v24 = vld [vmem:[#allocation7 + $0x44] ss:$8 sps:$4 sm:$0xff]   ;;  %v911_v25 = vld [vmem:[#allocation5 + $0x70] ss:$8 sps:$4 sm:$0xff]  }
  0x53   :  { %v927_v26 = vld [vmem:[#allocation7 + $0x40] ss:$8 sps:$4 sm:$0xff]   ;;  %v928_v28 = vld [vmem:[#allocation7 + $0x54] ss:$8 sps:$4 sm:$0xff]   ;;  %v930_v29 = vld [vmem:[#allocation7 + $0x50] ss:$8 sps:$4 sm:$0xff]  }
  0x54   :  { %204 = vmatpush1.bf16.msra.mxu0 %v896_v6  ;;  %459 = vmatpush1.bf16.msra.mxu1 %v918_v14  ;;  %v931_v30 = vld [vmem:[#allocation7 + $0x64] ss:$8 sps:$4 sm:$0xff]   ;;  %v933_v31 = vld [vmem:[#allocation7 + $0x60] ss:$8 sps:$4 sm:$0xff]   ;;  %v934_v32 = vld [vmem:[#allocation7 + $0x74] ss:$8 sps:$4 sm:$0xff]  }
  0x55   :  { %205 = vmatprep.subr.bf16.mxu0 %v897_v7  ;;  %460 = vmatprep.subr.bf16.mxu1 %v919_v16  ;;  %v936_v33 = vld [vmem:[#allocation7 + $0x70] ss:$8 sps:$4 sm:$0xff]   ;;  %v937_v34 = vld [vmem:[#allocation7 + $0x84] ss:$8 sps:$4 sm:$0xff]   ;;  %v939_v35 = vld [vmem:[#allocation7 + $0x80] ss:$8 sps:$4 sm:$0xff]  }
  0x56   :  { %v940_v36 = vld [vmem:[#allocation7 + $0x94] ss:$8 sps:$4 sm:$0xff]   ;;  %v942_v37 = vld [vmem:[#allocation7 + $0x90] ss:$8 sps:$4 sm:$0xff]   ;;  %v943_v38 = vld [vmem:[#allocation7 + $0xa4] ss:$8 sps:$4 sm:$0xff]  }
  0x57   :  { %v945_v39 = vld [vmem:[#allocation7 + $0xa0] ss:$8 sps:$4 sm:$0xff]   ;;  %v946_v40 = vld [vmem:[#allocation7 + $0xb4] ss:$8 sps:$4 sm:$0xff]   ;;  %v948_v41 = vld [vmem:[#allocation7 + $0xb0] ss:$8 sps:$4 sm:$0xff]  }
  0x58   :  { %206 = vmatpush1.bf16.msra.mxu0 %v899_v8  ;;  %461 = vmatpush1.bf16.msra.mxu1 %v921_v18  ;;  %v949_v42 = vld [vmem:[#allocation7 + $0xc4] ss:$8 sps:$4 sm:$0xff]   ;;  %v951_v43 = vld [vmem:[#allocation7 + $0xc0] ss:$8 sps:$4 sm:$0xff]   ;;  %v952_v44 = vld [vmem:[#allocation7 + $0xd4] ss:$8 sps:$4 sm:$0xff]  }
  0x59   :  { %207 = vmatprep.subr.bf16.mxu0 %v900_v9  ;;  %462 = vmatprep.subr.bf16.mxu1 %v922_v20  ;;  %v954_v45 = vld [vmem:[#allocation7 + $0xd0] ss:$8 sps:$4 sm:$0xff]   ;;  %v955_v46 = vld [vmem:[#allocation7 + $0xe4] ss:$8 sps:$4 sm:$0xff]   ;;  %v957_v47 = vld [vmem:[#allocation7 + $0xe0] ss:$8 sps:$4 sm:$0xff]  }
  0x5a   :  { %v958_v48 = vld [vmem:[#allocation7 + $0xf4] ss:$8 sps:$4 sm:$0xff]   ;;  %v960_v49 = vld [vmem:[#allocation7 + $0xf0] ss:$8 sps:$4 sm:$0xff]   ;;  %v961_v50 = vld [vmem:[#allocation8] ss:$8 sps:$4 sm:$0xff]  }
  0x5b   :  { %v963_v51 = vld [vmem:[#allocation8 + $0x4] ss:$8 sps:$4 sm:$0xff]   ;;  %v966_v52 = vld [vmem:[#allocation8 + $0x14] ss:$8 sps:$4 sm:$0xff]   ;;  %v964_v53 = vld [vmem:[#allocation8 + $0x10] ss:$8 sps:$4 sm:$0xff]  }
  0x5c   :  { %208 = vmatpush1.bf16.msra.mxu0 %v902_v13  ;;  %463 = vmatpush1.bf16.msra.mxu1 %v924_v22  ;;  %v969_v54 = vld [vmem:[#allocation8 + $0x24] ss:$8 sps:$4 sm:$0xff]   ;;  %v967_v55 = vld [vmem:[#allocation8 + $0x20] ss:$8 sps:$4 sm:$0xff]   ;;  %v972_v56 = vld [vmem:[#allocation8 + $0x34] ss:$8 sps:$4 sm:$0xff]  }
  0x5d   :  { %209 = vmatprep.subr.bf16.mxu0 %v903_v15  ;;  %464 = vmatprep.subr.bf16.mxu1 %v925_v24  ;;  %v970_v57 = vld [vmem:[#allocation8 + $0x30] ss:$8 sps:$4 sm:$0xff]   ;;  %v975_v58 = vld [vmem:[#allocation8 + $0x44] ss:$8 sps:$4 sm:$0xff]   ;;  %v973_v59 = vld [vmem:[#allocation8 + $0x40] ss:$8 sps:$4 sm:$0xff]  }
  0x5e   :  { %v978_v60 = vld [vmem:[#allocation8 + $0x54] ss:$8 sps:$4 sm:$0xff]   ;;  %v976_v61 = vld [vmem:[#allocation8 + $0x50] ss:$8 sps:$4 sm:$0xff]   ;;  %v981_v62 = vld [vmem:[#allocation8 + $0x64] ss:$8 sps:$4 sm:$0xff]  }
  0x5f   :  { %v979_v63 = vld [vmem:[#allocation8 + $0x60] ss:$8 sps:$4 sm:$0xff]   ;;  %v984_v0 = vld [vmem:[#allocation8 + $0x74] ss:$8 sps:$4 sm:$0xff]   ;;  %v982_v1 = vld [vmem:[#allocation8 + $0x70] ss:$8 sps:$4 sm:$0xff]  }
  0x60   :  { %210 = vmatpush1.bf16.msra.mxu0 %v905_v17  ;;  %465 = vmatpush1.bf16.msra.mxu1 %v927_v26  ;;  %v987_v2 = vld [vmem:[#allocation8 + $0x84] ss:$8 sps:$4 sm:$0xff]   ;;  %v985_v3 = vld [vmem:[#allocation8 + $0x80] ss:$8 sps:$4 sm:$0xff]   ;;  %v990_v4 = vld [vmem:[#allocation8 + $0x94] ss:$8 sps:$4 sm:$0xff]  }
  0x61   :  { %211 = vmatprep.subr.bf16.mxu0 %v906_v19  ;;  %466 = vmatprep.subr.bf16.mxu1 %v928_v28  ;;  %v988_v5 = vld [vmem:[#allocation8 + $0x90] ss:$8 sps:$4 sm:$0xff]   ;;  %v993_v6 = vld [vmem:[#allocation8 + $0xa4] ss:$8 sps:$4 sm:$0xff]   ;;  %v991_v7 = vld [vmem:[#allocation8 + $0xa0] ss:$8 sps:$4 sm:$0xff]  }
  0x62   :  { %v996_v8 = vld [vmem:[#allocation8 + $0xb4] ss:$8 sps:$4 sm:$0xff]   ;;  %v994_v9 = vld [vmem:[#allocation8 + $0xb0] ss:$8 sps:$4 sm:$0xff]   ;;  %v999_v10 = vld [vmem:[#allocation8 + $0xc4] ss:$8 sps:$4 sm:$0xff]  }
  0x63   :  { %v997_v11 = vld [vmem:[#allocation8 + $0xc0] ss:$8 sps:$4 sm:$0xff]   ;;  %v104_v13 = vshrl.u32 %v103_v12, 7  ;;  %v101_v15 = vld [vmem:[%s1275_s2] sm:$0x3]  ;;  %s1144_s8 = smov [#allocation10]  }
  0x64   :  { %212 = vmatpush1.bf16.msra.mxu0 %v908_v21  ;;  %467 = vmatpush1.bf16.msra.mxu1 %v930_v29  ;;  %s779_s9 = sshll.u32 %s1144_s8, 4  ;;  %s780_s9 = int_to_ptr.vmem [resolvable:$true] %s779_s9 }
  0x65   :  { %213 = vmatprep.subr.bf16.mxu0 %v909_v23  ;;  %468 = vmatprep.subr.bf16.mxu1 %v931_v30  ;;  %v105_v14 = vsub.s32 0, %v104_v13  ;;  %v109_v16 = vsub.s32 1, %v104_v13  ;;  %p1110_p5 = scmp.lt.s32.totalorder %s780_s9, %s780_s9 }
  0x67   :  { %v106_v17 = vrot.slane %v101_v15, %v105_v14  ;;  %v110_v18 = vrot.slane %v101_v15, %v109_v16 }
  0x68   :  { %214 = vmatpush1.bf16.msra.mxu0 %v911_v25  ;;  %469 = vmatpush1.bf16.msra.mxu1 %v933_v31 }
  0x69   :  { %470 = vmatprep.subr.bf16.mxu1 %v934_v32  ;;  %713 = vmatprep.subr.bf16.mxu0 %v963_v51 }
  0x6b   :  { %232 = vmatmul.mubr.bf16.vlgmr.msra.gmra.mrb[0].mxu0 %v912_v27 }
  0x6c   :  { %471 = vmatpush1.bf16.msra.mxu1 %v936_v33  ;;  %714 = vmatpush1.bf16.msra.mxu0 %v961_v50 }
  0x6d   :  { %472 = vmatprep.subr.bf16.mxu1 %v937_v34  ;;  %715 = vmatprep.subr.bf16.mxu0 %v966_v52 }
  0x70   :  { %473 = vmatpush1.bf16.msra.mxu1 %v939_v35  ;;  %716 = vmatpush1.bf16.msra.mxu0 %v964_v53 }
  0x71   :  { %474 = vmatprep.subr.bf16.mxu1 %v940_v36  ;;  %717 = vmatprep.subr.bf16.mxu0 %v969_v54 }
  0x74   :  { %475 = vmatpush1.bf16.msra.mxu1 %v942_v37  ;;  %718 = vmatpush1.bf16.msra.mxu0 %v967_v55  ;;  %v1002_v37 = vld [vmem:[#allocation8 + $0xd4] ss:$8 sps:$4 sm:$0xff]  }
  0x75   :  { %476 = vmatprep.subr.bf16.mxu1 %v943_v38  ;;  %719 = vmatprep.subr.bf16.mxu0 %v972_v56  ;;  %v1000_v38 = vld [vmem:[#allocation8 + $0xd0] ss:$8 sps:$4 sm:$0xff]  }
  0x78   :  { %477 = vmatpush1.bf16.msra.mxu1 %v945_v39  ;;  %720 = vmatpush1.bf16.msra.mxu0 %v970_v57  ;;  %v1005_v39 = vld [vmem:[#allocation8 + $0xe4] ss:$8 sps:$4 sm:$0xff]  }
  0x79   :  { %478 = vmatprep.subr.bf16.mxu1 %v946_v40  ;;  %721 = vmatprep.subr.bf16.mxu0 %v975_v58  ;;  %v1003_v40 = vld [vmem:[#allocation8 + $0xe0] ss:$8 sps:$4 sm:$0xff]  }
  0x7c   :  { %479 = vmatpush1.bf16.msra.mxu1 %v948_v41  ;;  %722 = vmatpush1.bf16.msra.mxu0 %v973_v59  ;;  %v1008_v41 = vld [vmem:[#allocation8 + $0xf4] ss:$8 sps:$4 sm:$0xff]  }
  0x7d   :  { %480 = vmatprep.subr.bf16.mxu1 %v949_v42  ;;  %723 = vmatprep.subr.bf16.mxu0 %v978_v60  ;;  %v1006_v42 = vld [vmem:[#allocation8 + $0xf0] ss:$8 sps:$4 sm:$0xff]  }
  0x80   :  { %481 = vmatpush1.bf16.msra.mxu1 %v951_v43  ;;  %724 = vmatpush1.bf16.msra.mxu0 %v976_v61  ;;  %v284_v43 = vld [vmem:[%s1277_s4] sm:$0x3] }
  0x81   :  { %482 = vmatprep.subr.bf16.mxu1 %v952_v44  ;;  %725 = vmatprep.subr.bf16.mxu0 %v981_v62  ;;  %v289_v44 = vrot.slane %v284_v43, %v105_v14 }
  0x84   :  { %483 = vmatpush1.bf16.msra.mxu1 %v954_v45  ;;  %726 = vmatpush1.bf16.msra.mxu0 %v979_v63  ;;  %v293_v45 = vrot.slane %v284_v43, %v109_v16 }
  0x85   :  { %484 = vmatprep.subr.bf16.mxu1 %v955_v46  ;;  %727 = vmatprep.subr.bf16.mxu0 %v984_v0  ;;  %v541_v0 = vld [vmem:[%s1279_s6] sm:$0x3]  ;;  %s1105_s6 = scalar_lea.vmem %s780_s9, 256 }
  0x86   :  { %p1106_p4 = scmp.ne.s32.totalorder %s780_s9, %s1105_s6  ;;  %p1111_p6 = scmp.lt.s32.totalorder %s1105_s6, %s1105_s6 }
  0x88   :  { %485 = vmatpush1.bf16.msra.mxu1 %v957_v47  ;;  %728 = vmatpush1.bf16.msra.mxu0 %v982_v1  ;;  %v546_v1 = vrot.slane %v541_v0, %v105_v14  ;;  %p1112_p7 = por %p1111_p6, %p1110_p5 }
  0x89   :  { %486 = vmatprep.subr.bf16.mxu1 %v958_v48  ;;  %729 = vmatprep.subr.bf16.mxu0 %v987_v2  ;;  %v550_v2 = vrot.slane %v541_v0, %v109_v16 }
  0x8a   :  { %p1113_p8 = pnand %p1112_p7, %p1106_p4 }
  0x8c   :  { %487 = vmatpush1.bf16.msra.mxu1 %v960_v49  ;;  %730 = vmatpush1.bf16.msra.mxu0 %v985_v3 }
  0x8d   :  { %731 = vmatprep.subr.bf16.mxu0 %v990_v4 }
  0x90   :  { %732 = vmatpush1.bf16.msra.mxu0 %v988_v5 }
  0x91   :  { %733 = vmatprep.subr.bf16.mxu0 %v993_v6 }
  0x94   :  { %734 = vmatpush1.bf16.msra.mxu0 %v991_v7 }
  0x95   :  { %735 = vmatprep.subr.bf16.mxu0 %v996_v8 }
  0x98   :  { %736 = vmatpush1.bf16.msra.mxu0 %v994_v9 }
  0x99   :  { %737 = vmatprep.subr.bf16.mxu0 %v999_v10 }
  0x9c   :  { %738 = vmatpush1.bf16.msra.mxu0 %v997_v11 }
  0x9d   :  { %739 = vmatprep.subr.bf16.mxu0 %v1002_v37 }
  0xa0   :  { %740 = vmatpush1.bf16.msra.mxu0 %v1000_v38 }
  0xa1   :  { %741 = vmatprep.subr.bf16.mxu0 %v1005_v39 }
  0xa4   :  { %742 = vmatpush1.bf16.msra.mxu0 %v1003_v40 }
  0xa5   :  { %743 = vmatprep.subr.bf16.mxu0 %v1008_v41 }
  0xa8   :  { %744 = vmatpush1.bf16.msra.mxu0 %v1006_v42 }
 0x13e   :  { %v233_v19 = vpop.f32.mrb[0].mxu0 }
 0x13f   :  { %v234_v20 = vadd.f32 %v233_v19, %v106_v17  ;;  %v235_v21 = vpop.f32.mrb[1].mxu0 }
 0x140   :  { %v236_v22 = vadd.f32 %v235_v21, %v110_v18  ;;  %v237_v23 = vpop.f32.mrb[2].mxu0 }
 0x141   :  { %v242_v24 = vmul.f32 0.2, %v234_v20  ;;  %v238_v25 = vadd.f32 %v237_v23, %v106_v17  ;;  %v239_v26 = vpop.f32.mrb[3].mxu0 }
 0x142   :  { %v243_v27 = vmul.f32 0.2, %v236_v22  ;;  %v240_v28 = vadd.f32 %v239_v26, %v110_v18 }
 0x143   :  { %v244_v29 = vmul.f32 0.2, %v238_v25  ;;  %v246_v31 = vmax.f32 %v234_v20, %v242_v24 }
 0x144   :  { %v245_v30 = vmul.f32 0.2, %v240_v28  ;;  %v247_v33 = vmax.f32 %v236_v22, %v243_v27 }
 0x145   :  { %v248_v32 = vmax.f32 %v238_v25, %v244_v29 }
 0x146   :  { %v249_v34 = vmax.f32 %v240_v28, %v245_v30 }
 0x147   :  { %v250_v35 = vpack.c.bf16 %v248_v32, %v246_v31 }
 0x148   :  { %v251_v36 = vpack.c.bf16 %v249_v34, %v247_v33 }
 0x14a   :  { %488 = vmatprep.mubr.bf16.mxu1 %v251_v36 }
 0x14b   :  { %489 = vmatmul.mubr.bf16.vlgmr.msra.gmra.mrb[0].mxu1 %v250_v35 }
 0x21e   :  { %v490_v46 = vpop.f32.mrb[0].mxu1 }
 0x21f   :  { %v491_v47 = vadd.f32 %v490_v46, %v289_v44  ;;  %v492_v48 = vpop.f32.mrb[1].mxu1 }
 0x220   :  { %v493_v49 = vadd.f32 %v492_v48, %v293_v45  ;;  %v494_v50 = vpop.f32.mrb[2].mxu1 }
 0x221   :  { %v499_v51 = vmul.f32 0.2, %v491_v47  ;;  %v495_v52 = vadd.f32 %v494_v50, %v289_v44  ;;  %v496_v53 = vpop.f32.mrb[3].mxu1 }
 0x222   :  { %v500_v54 = vmul.f32 0.2, %v493_v49  ;;  %v497_v55 = vadd.f32 %v496_v53, %v293_v45 }
 0x223   :  { %v501_v56 = vmul.f32 0.2, %v495_v52  ;;  %v503_v58 = vmax.f32 %v491_v47, %v499_v51 }
 0x224   :  { %v502_v57 = vmul.f32 0.2, %v497_v55  ;;  %v504_v60 = vmax.f32 %v493_v49, %v500_v54 }
 0x225   :  { %v505_v59 = vmax.f32 %v495_v52, %v501_v56 }
 0x226   :  { %v506_v61 = vmax.f32 %v497_v55, %v502_v57 }
 0x227   :  { %v507_v62 = vpack.c.bf16 %v505_v59, %v503_v58 }
 0x228   :  { %v508_v63 = vpack.c.bf16 %v506_v61, %v504_v60 }
 0x22a   :  { %745 = vmatprep.mubr.bf16.mxu0 %v508_v63 }
 0x22b   :  { %746 = vmatmul.mubr.bf16.vlgmr.msra.gmra.mrb[4].mxu0 %v507_v62 }
 0x2fe   :  { %v747_v3 = vpop.f32.mrb[4].mxu0 }
 0x2ff   :  { %v748_v4 = vadd.f32 %v747_v3, %v546_v1  ;;  %v749_v5 = vpop.f32.mrb[5].mxu0 }
 0x300   :  { %v750_v6 = vadd.f32 %v749_v5, %v550_v2  ;;  %v751_v7 = vpop.f32.mrb[6].mxu0 }
 0x301   :  { %1009 = vtanh.f32 %v748_v4  ;;  %v752_v8 = vadd.f32 %v751_v7, %v546_v1  ;;  %v753_v9 = vpop.f32.mrb[7].mxu0 }
 0x302   :  { %1011 = vtanh.f32 %v750_v6  ;;  %v754_v10 = vadd.f32 %v753_v9, %v550_v2 }
 0x303   :  { %1013 = vtanh.f32 %v752_v8 }
 0x304   :  { %1015 = vtanh.f32 %v754_v10 }
 0x30b   :  { %v1010_v11 = vpop.eup %1009 }
 0x30c   :  { %v1012_v12 = vpop.eup %1011 }
 0x30d   :  { %v1014_v13 = vpop.eup %1013  ;;  %v876_v15 = vpack.c.bf16 %v1012_v12, %v1010_v11 }
 0x30e   :  { %v1016_v14 = vpop.eup %1015 }
 0x30f   :  { %v877_v16 = vpack.c.bf16 %v1016_v14, %v1014_v13  ;;  %772 = vst [vmem:[#allocation10] sm:$0xff] %v876_v15 }
 0x311   :  { %773 = vst [vmem:[#allocation10 + $0x8] sm:$0xff] %v877_v16 }
 0x312   :  { %1116 = shalt.err (!%p1113_p8)
}
 0x313   :  { %s1117_s14 = scalar_lea.hbm %s1280_s7, 256 }
 0x314   :  { %p1118_p9 = scmp.ne.s32.totalorder %s1280_s7, %s1117_s14  ;;  %p1121_p10 = scmp.lt.u32.totalorder %s1117_s14, %s1280_s7 }
 0x316   :  { %p1123_p11 = pnand %p1121_p10, %p1118_p9 }
 0x318   :  { %1126 = shalt.err (!%p1123_p11)
}
 0x319   :  { %785 = dma.vmem_to_hbm [thread:$0]  %s780_s9, 256, %s1280_s7, [#allocation4], %s1136_s11, %s1136_s11, %s1137_s12  }
 0x31a   :  { %1133 = dma.done.wait [#allocation4], 256  }
 0x31b   :  { %1134 = vsyncadd [#allocation4], 4294967040 }
 0x31c   :  { %789 = vsyncpa [#allocation3], 1 }
 0x31d   :  { %790 = vsyncpa [#allocation6], 1 }
 0x31e   :  { %791 = vsyncpa [#allocation9], 1 }
 0x31f   :  { %792 = vsyncpa [#allocation4], 1 }

</bundles_post_ra>
